<compile_context>
chip_gen: v7x
topology: tpu7x:2x2x1
jax: 0.10.0
libtpu: 0.0.40
codegen_flags: <defaults>
</compile_context>

<pallas_src>
import functools

import jax
import jax.numpy as jnp
from jax import lax
from jax.experimental import pallas as pl
from jax.experimental.pallas import tpu as pltpu

_LN_EPS = 1e-5  # nn.LayerNorm default


def _round_up(a, b):
    return (a + b - 1) // b * b


def _cdiv(a, b):
    return -(-a // b)


def _fused_mlp_stack_kernel(*refs, layer_N, use_relu, valid_n, compute_dtype):
    """Whole MLP stack for one batch tile, fully resident on-chip.

    refs (layer_N > 0):  x(tm,Kp), w1(Kp,Hp), p1(3,Hp), w2(L,Hp,Hp), p2(L,3,Hp), o(tm,Hp)
    refs (layer_N == 0): x(tm,Kp), w1(Kp,Hp), p1(3,Hp), o(tm,Hp)
    p* rows are [bias; gamma; beta] (f32); weights are pre-transposed & padded.
    """
    if layer_N > 0:
        x_ref, w1_ref, p1_ref, w2_ref, p2_ref, o_ref = refs
    else:
        x_ref, w1_ref, p1_ref, o_ref = refs

    Hp = o_ref.shape[-1]

    # Mask for padded feature lanes (only needed for the variance when Hp > valid_n).
    if valid_n != Hp:
        col = lax.broadcasted_iota(jnp.int32, (1, Hp), 1)
        mask = (col < valid_n).astype(jnp.float32)
    else:
        mask = None
    inv_n = jnp.float32(1.0 / valid_n)

    def block(h_in, w, packed):
        b = packed[0:1, :]
        g = packed[1:2, :]
        beta = packed[2:3, :]

        # MXU matmul in compute_dtype with f32 accumulation.
        h = jnp.dot(h_in.astype(compute_dtype), w, preferred_element_type=jnp.float32)
        h = h + b

        # Activation (VPU relu or EUP tanh).
        h = jnp.maximum(h, 0.0) if use_relu else jnp.tanh(h)

        # LayerNorm over the valid features. Padded output lanes of h are
        # exactly 0 (zero-padded weight cols/bias, act(0)=0), so the mean needs
        # no masking; only the centered term must be re-masked for the variance.
        mean = jnp.sum(h, axis=-1, keepdims=True) * inv_n
        centered = h - mean
        if mask is not None:
            centered = centered * mask
        var = jnp.sum(centered * centered, axis=-1, keepdims=True) * inv_n
        normed = centered * lax.rsqrt(var + _LN_EPS)
        # gamma/beta are zero-padded -> padded lanes stay exactly 0 for the
        # next layer's matmul.
        return normed * g + beta

    h = block(x_ref[...], w1_ref[...], p1_ref[...])
    for l in range(layer_N):          # layer_N is small & static -> unrolled
        h = block(h, w2_ref[l], p2_ref[l])
    o_ref[...] = h.astype(o_ref.dtype)


def pack_mlp_params(params, compute_dtype=jnp.bfloat16):
    """One-time weight prep: pad to lane-dense shapes, stack fc2 layers, cast.

    Call this ONCE (outside the per-step forward) so the per-call graph does
    not repeat the padding / casting HBM traffic on every invocation.

    params: list of (W, b, gamma, beta); W stored as (in_features, out_features)
            so the kernel computes x @ W (== PyTorch x @ W.T).
    """
    w1, b1, g1, be1 = params[0]
    K, H = w1.shape
    layer_N = len(params) - 1
    Kp = _round_up(K, 128)          # lane-dense contraction dim
    Hp = _round_up(H, 128)          # lane-dense feature / output dim

    def pad2(a, r, c):
        return jnp.pad(a, ((0, r - a.shape[0]), (0, c - a.shape[1])))

    def pad1(a):
        return jnp.pad(a, (0, Hp - H))

    w1p = pad2(w1, Kp, Hp).astype(compute_dtype)
    p1 = jnp.stack([pad1(b1), pad1(g1), pad1(be1)], axis=0).astype(jnp.float32)

    if layer_N > 0:
        w2p = jnp.stack([pad2(w, Hp, Hp) for (w, _, _, _) in params[1:]],
                        axis=0).astype(compute_dtype)
        p2 = jnp.stack(
            [jnp.stack([pad1(b), pad1(g), pad1(be)], axis=0)
             for (_, b, g, be) in params[1:]], axis=0).astype(jnp.float32)
    else:
        w2p, p2 = None, None   # no dummy block DMA'd when layer_N == 0

    return dict(w1p=w1p, p1=p1, w2p=w2p, p2=p2, K=K, H=H, Kp=Kp, Hp=Hp,
                layer_N=layer_N, compute_dtype=compute_dtype)


def _vmem_capacity_bytes():
    try:
        return int(pltpu.get_tpu_info().vmem_capacity_bytes)
    except Exception:
        return 64 << 20   # conservative fallback (v7x per-TensorCore)


def mlp_layer_forward(x, packed, *, use_relu=True, out_dtype=None, tm=None):
    """Full MLPLayer forward as one fused Pallas call (params pre-packed)."""
    M, K = x.shape
    assert K == packed["K"], "input feature dim mismatch"
    H, Kp, Hp = packed["H"], packed["Kp"], packed["Hp"]
    layer_N = packed["layer_N"]
    compute_dtype = packed["compute_dtype"]
    if out_dtype is None:
        out_dtype = compute_dtype     # bf16 writeback halves store-path bytes
    w1p, p1, w2p, p2 = packed["w1p"], packed["p1"], packed["w2p"], packed["p2"]
    L = layer_N

    cin = jnp.dtype(compute_dtype).itemsize
    cout = jnp.dtype(out_dtype).itemsize

    # ---- VMEM budgeting (generation-aware, weights single-buffered) --------
    cap = _vmem_capacity_bytes()
    weight_bytes = (Kp * Hp + L * Hp * Hp) * cin
    param_bytes = (1 + L) * 8 * Hp * 4            # (3,Hp) pads to 8 sublanes

    if tm is None:
        budget = cap - (16 << 20) - weight_bytes - param_bytes
        # x/out double-buffered tiles + f32 working set inside the body.
        per_row = 2 * Kp * cin + 2 * Hp * cout + 6 * Hp * 4
        tm_max = max(32, min(1024, (budget // per_row) // 32 * 32)) if budget > 0 else 32
        # At least two batch tiles (when the batch allows) so the "parallel"
        # grid axis can shard across the 2 TensorCores on v7x (~0.35us extra on
        # single-TC parts); tile size chosen to minimize zero-row padding.
        min_steps = 2 if M >= 64 else 1
        steps = max(_cdiv(M, tm_max), min_steps)
        tm = _round_up(_cdiv(M, steps), 32)
    M_pad = _round_up(M, tm)

    io_bytes = 2 * tm * Kp * cin + 2 * tm * Hp * cout
    working_bytes = 6 * tm * Hp * 4
    needed = weight_bytes + param_bytes + io_bytes + working_bytes + (4 << 20)
    vmem_limit = int(max(min(needed, cap - (8 << 20)), 32 << 20))

    # ---- input: pad batch + features with zeros (zeros are exact no-ops) ----
    xp = jnp.pad(x, ((0, M_pad - M), (0, Kp - K))).astype(compute_dtype)

    kernel = functools.partial(
        _fused_mlp_stack_kernel,
        layer_N=layer_N, use_relu=use_relu, valid_n=H, compute_dtype=compute_dtype)

    # Grid-invariant operands: constant index_map -> no re-DMA per step, and
    # Buffered(1) halves their VMEM footprint vs the default double-buffering.
    in_specs = [
        pl.BlockSpec((tm, Kp), lambda i: (i, 0)),   # x batch tile (default 2-deep;
                                                    # bump to Buffered(3) on v5e if
                                                    # profiling shows exposed DMA)
        pl.BlockSpec((Kp, Hp), lambda i: (0, 0), pipeline_mode=pl.Buffered(1)),
        pl.BlockSpec((3, Hp), lambda i: (0, 0), pipeline_mode=pl.Buffered(1)),
    ]
    args = [xp, w1p, p1]
    if layer_N > 0:
        in_specs += [
            pl.BlockSpec((L, Hp, Hp), lambda i: (0, 0, 0), pipeline_mode=pl.Buffered(1)),
            pl.BlockSpec((L, 3, Hp), lambda i: (0, 0, 0), pipeline_mode=pl.Buffered(1)),
        ]
        args += [w2p, p2]

    out = pl.pallas_call(
        kernel,
        out_shape=jax.ShapeDtypeStruct((M_pad, Hp), out_dtype),
        grid_spec=pltpu.PrefetchScalarGridSpec(
            num_scalar_prefetch=0,
            grid=(M_pad // tm,),
            in_specs=in_specs,
            out_specs=pl.BlockSpec((tm, Hp), lambda i: (i, 0)),
        ),
        compiler_params=pltpu.CompilerParams(
            dimension_semantics=("parallel",),
            vmem_limit_bytes=vmem_limit,
        ),
    )(*args)

    if M_pad != M or Hp != H:
        out = out[:M, :H]
    return out


def make_mlp_params(key, input_dim, hidden_size, layer_N, use_relu=True):
    """Deterministic synthetic parameters mirroring MLPLayer.__init__ shapes.

    Scaled-normal init (gain * fan-in scaling); biases zero; LayerNorm affine
    params (ones, zeros) as nn.LayerNorm defaults. W stored (in, out).
    """
    gain = jnp.sqrt(2.0) if use_relu else 5.0 / 3.0
    params = []
    dims = [(input_dim, hidden_size)] + [(hidden_size, hidden_size)] * layer_N
    for (fan_in, fan_out) in dims:
        key, sub = jax.random.split(key)
        w = gain * jax.random.normal(sub, (fan_in, fan_out), jnp.float32) / jnp.sqrt(fan_in)
        b = jnp.zeros((fan_out,), jnp.float32)
        g = jnp.ones((fan_out,), jnp.float32)
        beta = jnp.zeros((fan_out,), jnp.float32)
        params.append((w, b, g, beta))
    return params


def _reference_forward(x, params, use_relu=True):
    # Pure-JAX f32 reference (matches the PyTorch module semantics).
    for (w, b, g, beta) in params:
        h = x @ w + b
        h = jnp.maximum(h, 0.0) if use_relu else jnp.tanh(h)
        mean = jnp.mean(h, axis=-1, keepdims=True)
        var = jnp.mean((h - mean) ** 2, axis=-1, keepdims=True)
        x = (h - mean) * lax.rsqrt(var + _LN_EPS) * g + beta
    return x


if __name__ == "__main__":
    # Small shapes consistent with the module: MLPLayer(input_dim=16, hidden=32,
    # layer_N=2, use_ReLU=True); batch of 20 flat observations (non-multiple of 8
    # on purpose to exercise the batch-padding path).
    input_dim, hidden_size, layer_N = 16, 32, 2
    batch = 20

    key = jax.random.PRNGKey(0)
    key, xkey = jax.random.split(key)
    x = jax.random.normal(xkey, (batch, input_dim), jnp.float32)

    # ---- ReLU stack, layer_N=2 ----
    params = make_mlp_params(key, input_dim, hidden_size, layer_N, use_relu=True)
    ref = _reference_forward(x, params, use_relu=True)

    packed_f32 = pack_mlp_params(params, compute_dtype=jnp.float32)
    out_f32 = jax.block_until_ready(
        mlp_layer_forward(x, packed_f32, use_relu=True, out_dtype=jnp.float32))
    assert out_f32.shape == (batch, hidden_size)
    assert jnp.allclose(out_f32, ref, atol=1e-4, rtol=1e-4), "f32 relu mismatch vs reference"

    packed_bf16 = pack_mlp_params(params, compute_dtype=jnp.bfloat16)
    out_bf16 = jax.block_until_ready(
        mlp_layer_forward(x, packed_bf16, use_relu=True))   # bf16 output writeback
    assert out_bf16.shape == (batch, hidden_size)
    out_bf16_f32 = out_bf16.astype(jnp.float32)
    assert bool(jnp.all(jnp.isfinite(out_bf16_f32)))
    assert jnp.allclose(out_bf16_f32, ref, atol=1e-1, rtol=1e-1), "bf16 mismatch vs reference"

    # ---- Tanh, layer_N=0 (exercises the no-fc2 code path) ----
    params0 = make_mlp_params(jax.random.PRNGKey(1), input_dim, hidden_size, 0, use_relu=False)
    ref0 = _reference_forward(x, params0, use_relu=False)
    packed0 = pack_mlp_params(params0, compute_dtype=jnp.float32)
    out0 = jax.block_until_ready(
        mlp_layer_forward(x, packed0, use_relu=False, out_dtype=jnp.float32))
    assert out0.shape == (batch, hidden_size)
    assert jnp.allclose(out0, ref0, atol=5e-3, rtol=5e-3), "f32 tanh mismatch vs reference"

    print("KERNEL_OK")
</pallas_src>

<mosaic_0001>
module attributes {stable_mosaic.version = 11 : i64} {
  func.func @_fused_mlp_stack_kernel(%arg0: i32, %arg1: memref<32x128xf32, #tpu.memory_space<vmem>>, %arg2: memref<128x128xf32, #tpu.memory_space<vmem>>, %arg3: memref<3x128xf32, #tpu.memory_space<vmem>>, %arg4: memref<2x128x128xf32, #tpu.memory_space<vmem>>, %arg5: memref<2x3x128xf32, #tpu.memory_space<vmem>>, %arg6: memref<32x128xf32, #tpu.memory_space<vmem>>) attributes {dimension_semantics = [#tpu.dimension_semantics<parallel>], iteration_bounds = array<i64: 1>, scalar_prefetch = 0 : i64, scratch_operands = 0 : i64, tpu.core_type = #tpu.core_type<tc>, window_params = [{transform_indices = @transform_0, window_bounds = array<i64: 32, 128>}, {pipeline_mode = #tpu.pipeline_mode<synchronous>, transform_indices = @transform_1, window_bounds = array<i64: 128, 128>}, {pipeline_mode = #tpu.pipeline_mode<synchronous>, transform_indices = @transform_2, window_bounds = array<i64: 3, 128>}, {pipeline_mode = #tpu.pipeline_mode<synchronous>, transform_indices = @transform_3, window_bounds = array<i64: 2, 128, 128>}, {pipeline_mode = #tpu.pipeline_mode<synchronous>, transform_indices = @transform_4, window_bounds = array<i64: 2, 3, 128>}, {transform_indices = @transform_5, window_bounds = array<i64: 32, 128>}]} {
    %0 = tpu.iota {dimensions = array<i32: 1>} : vector<1x128xi32>
    %c32_i32 = arith.constant 32 : i32
    %1 = vector.broadcast %c32_i32 : i32 to vector<1x128xi32>
    %2 = arith.cmpi slt, %0, %1 : vector<1x128xi32>
    %3 = arith.extui %2 : vector<1x128xi1> to vector<1x128xi32>
    %4 = arith.sitofp %3 : vector<1x128xi32> to vector<1x128xf32>
    %c0 = arith.constant 0 : index
    %c0_0 = arith.constant 0 : index
    %5 = vector.load %arg1[%c0, %c0_0] : memref<32x128xf32, #tpu.memory_space<vmem>>, vector<32x128xf32>
    %c0_1 = arith.constant 0 : index
    %c0_2 = arith.constant 0 : index
    %6 = vector.load %arg2[%c0_1, %c0_2] : memref<128x128xf32, #tpu.memory_space<vmem>>, vector<128x128xf32>
    %c0_3 = arith.constant 0 : index
    %c0_4 = arith.constant 0 : index
    %7 = vector.load %arg3[%c0_3, %c0_4] : memref<3x128xf32, #tpu.memory_space<vmem>>, vector<3x128xf32>
    %8 = vector.extract_strided_slice %7 {offsets = [0, 0], sizes = [1, 128], strides = [1, 1]} : vector<3x128xf32> to vector<1x128xf32>
    %9 = vector.extract_strided_slice %7 {offsets = [1, 0], sizes = [1, 128], strides = [1, 1]} : vector<3x128xf32> to vector<1x128xf32>
    %10 = vector.extract_strided_slice %7 {offsets = [2, 0], sizes = [1, 128], strides = [1, 1]} : vector<3x128xf32> to vector<1x128xf32>
    %cst = arith.constant dense<0.000000e+00> : vector<32x128xf32>
    %11 = tpu.matmul %5, %6, %cst {dimension_numbers = #tpu.dot_dimension_numbers<[1], [0], [0], [1], [0, 0, 1, 1], [], []>} : vector<32x128xf32>, vector<128x128xf32>, vector<32x128xf32> -> vector<32x128xf32>
    %12 = vector.broadcast %8 : vector<1x128xf32> to vector<32x128xf32>
    %13 = arith.addf %11, %12 : vector<32x128xf32>
    %cst_5 = arith.constant 0.000000e+00 : f32
    %14 = vector.broadcast %cst_5 : f32 to vector<32x128xf32>
    %15 = arith.maximumf %13, %14 : vector<32x128xf32>
    %cst_6 = arith.constant dense<0.000000e+00> : vector<32xf32>
    %16 = vector.multi_reduction <add>, %15, %cst_6 [1] : vector<32x128xf32> to vector<32xf32>
    %17 = vector.shape_cast %16 : vector<32xf32> to vector<32x1xf32>
    %cst_7 = arith.constant 3.125000e-02 : f32
    %18 = vector.broadcast %cst_7 : f32 to vector<32x1xf32>
    %19 = arith.mulf %17, %18 : vector<32x1xf32>
    %20 = vector.broadcast %19 : vector<32x1xf32> to vector<32x128xf32>
    %21 = arith.subf %15, %20 : vector<32x128xf32>
    %22 = vector.broadcast %4 : vector<1x128xf32> to vector<32x128xf32>
    %23 = arith.mulf %21, %22 : vector<32x128xf32>
    %24 = arith.mulf %23, %23 : vector<32x128xf32>
    %cst_8 = arith.constant dense<0.000000e+00> : vector<32xf32>
    %25 = vector.multi_reduction <add>, %24, %cst_8 [1] : vector<32x128xf32> to vector<32xf32>
    %26 = vector.shape_cast %25 : vector<32xf32> to vector<32x1xf32>
    %cst_9 = arith.constant 3.125000e-02 : f32
    %27 = vector.broadcast %cst_9 : f32 to vector<32x1xf32>
    %28 = arith.mulf %26, %27 : vector<32x1xf32>
    %cst_10 = arith.constant 9.99999974E-6 : f32
    %29 = vector.broadcast %cst_10 : f32 to vector<32x1xf32>
    %30 = arith.addf %28, %29 : vector<32x1xf32>
    %31 = math.rsqrt %30 : vector<32x1xf32>
    %32 = vector.broadcast %31 : vector<32x1xf32> to vector<32x128xf32>
    %33 = arith.mulf %23, %32 : vector<32x128xf32>
    %34 = vector.broadcast %9 : vector<1x128xf32> to vector<32x128xf32>
    %35 = arith.mulf %33, %34 : vector<32x128xf32>
    %36 = vector.broadcast %10 : vector<1x128xf32> to vector<32x128xf32>
    %37 = arith.addf %35, %36 : vector<32x128xf32>
    %c0_11 = arith.constant 0 : index
    %c0_12 = arith.constant 0 : index
    %c0_13 = arith.constant 0 : index
    %38 = vector.load %arg4[%c0_11, %c0_12, %c0_13] : memref<2x128x128xf32, #tpu.memory_space<vmem>>, vector<1x128x128xf32>
    %39 = vector.shape_cast %38 : vector<1x128x128xf32> to vector<128x128xf32>
    %c0_14 = arith.constant 0 : index
    %c0_15 = arith.constant 0 : index
    %c0_16 = arith.constant 0 : index
    %40 = vector.load %arg5[%c0_14, %c0_15, %c0_16] : memref<2x3x128xf32, #tpu.memory_space<vmem>>, vector<1x3x128xf32>
    %41 = vector.shape_cast %40 : vector<1x3x128xf32> to vector<3x128xf32>
    %42 = vector.extract_strided_slice %41 {offsets = [0, 0], sizes = [1, 128], strides = [1, 1]} : vector<3x128xf32> to vector<1x128xf32>
    %43 = vector.extract_strided_slice %41 {offsets = [1, 0], sizes = [1, 128], strides = [1, 1]} : vector<3x128xf32> to vector<1x128xf32>
    %44 = vector.extract_strided_slice %41 {offsets = [2, 0], sizes = [1, 128], strides = [1, 1]} : vector<3x128xf32> to vector<1x128xf32>
    %cst_17 = arith.constant dense<0.000000e+00> : vector<32x128xf32>
    %45 = tpu.matmul %37, %39, %cst_17 {dimension_numbers = #tpu.dot_dimension_numbers<[1], [0], [0], [1], [0, 0, 1, 1], [], []>} : vector<32x128xf32>, vector<128x128xf32>, vector<32x128xf32> -> vector<32x128xf32>
    %46 = vector.broadcast %42 : vector<1x128xf32> to vector<32x128xf32>
    %47 = arith.addf %45, %46 : vector<32x128xf32>
    %cst_18 = arith.constant 0.000000e+00 : f32
    %48 = vector.broadcast %cst_18 : f32 to vector<32x128xf32>
    %49 = arith.maximumf %47, %48 : vector<32x128xf32>
    %cst_19 = arith.constant dense<0.000000e+00> : vector<32xf32>
    %50 = vector.multi_reduction <add>, %49, %cst_19 [1] : vector<32x128xf32> to vector<32xf32>
    %51 = vector.shape_cast %50 : vector<32xf32> to vector<32x1xf32>
    %cst_20 = arith.constant 3.125000e-02 : f32
    %52 = vector.broadcast %cst_20 : f32 to vector<32x1xf32>
    %53 = arith.mulf %51, %52 : vector<32x1xf32>
    %54 = vector.broadcast %53 : vector<32x1xf32> to vector<32x128xf32>
    %55 = arith.subf %49, %54 : vector<32x128xf32>
    %56 = vector.broadcast %4 : vector<1x128xf32> to vector<32x128xf32>
    %57 = arith.mulf %55, %56 : vector<32x128xf32>
    %58 = arith.mulf %57, %57 : vector<32x128xf32>
    %cst_21 = arith.constant dense<0.000000e+00> : vector<32xf32>
    %59 = vector.multi_reduction <add>, %58, %cst_21 [1] : vector<32x128xf32> to vector<32xf32>
    %60 = vector.shape_cast %59 : vector<32xf32> to vector<32x1xf32>
    %cst_22 = arith.constant 3.125000e-02 : f32
    %61 = vector.broadcast %cst_22 : f32 to vector<32x1xf32>
    %62 = arith.mulf %60, %61 : vector<32x1xf32>
    %cst_23 = arith.constant 9.99999974E-6 : f32
    %63 = vector.broadcast %cst_23 : f32 to vector<32x1xf32>
    %64 = arith.addf %62, %63 : vector<32x1xf32>
    %65 = math.rsqrt %64 : vector<32x1xf32>
    %66 = vector.broadcast %65 : vector<32x1xf32> to vector<32x128xf32>
    %67 = arith.mulf %57, %66 : vector<32x128xf32>
    %68 = vector.broadcast %43 : vector<1x128xf32> to vector<32x128xf32>
    %69 = arith.mulf %67, %68 : vector<32x128xf32>
    %70 = vector.broadcast %44 : vector<1x128xf32> to vector<32x128xf32>
    %71 = arith.addf %69, %70 : vector<32x128xf32>
    %c1 = arith.constant 1 : index
    %c0_24 = arith.constant 0 : index
    %c0_25 = arith.constant 0 : index
    %72 = vector.load %arg4[%c1, %c0_24, %c0_25] : memref<2x128x128xf32, #tpu.memory_space<vmem>>, vector<1x128x128xf32>
    %73 = vector.shape_cast %72 : vector<1x128x128xf32> to vector<128x128xf32>
    %c1_26 = arith.constant 1 : index
    %c0_27 = arith.constant 0 : index
    %c0_28 = arith.constant 0 : index
    %74 = vector.load %arg5[%c1_26, %c0_27, %c0_28] : memref<2x3x128xf32, #tpu.memory_space<vmem>>, vector<1x3x128xf32>
    %75 = vector.shape_cast %74 : vector<1x3x128xf32> to vector<3x128xf32>
    %76 = vector.extract_strided_slice %75 {offsets = [0, 0], sizes = [1, 128], strides = [1, 1]} : vector<3x128xf32> to vector<1x128xf32>
    %77 = vector.extract_strided_slice %75 {offsets = [1, 0], sizes = [1, 128], strides = [1, 1]} : vector<3x128xf32> to vector<1x128xf32>
    %78 = vector.extract_strided_slice %75 {offsets = [2, 0], sizes = [1, 128], strides = [1, 1]} : vector<3x128xf32> to vector<1x128xf32>
    %cst_29 = arith.constant dense<0.000000e+00> : vector<32x128xf32>
    %79 = tpu.matmul %71, %73, %cst_29 {dimension_numbers = #tpu.dot_dimension_numbers<[1], [0], [0], [1], [0, 0, 1, 1], [], []>} : vector<32x128xf32>, vector<128x128xf32>, vector<32x128xf32> -> vector<32x128xf32>
    %80 = vector.broadcast %76 : vector<1x128xf32> to vector<32x128xf32>
    %81 = arith.addf %79, %80 : vector<32x128xf32>
    %cst_30 = arith.constant 0.000000e+00 : f32
    %82 = vector.broadcast %cst_30 : f32 to vector<32x128xf32>
    %83 = arith.maximumf %81, %82 : vector<32x128xf32>
    %cst_31 = arith.constant dense<0.000000e+00> : vector<32xf32>
    %84 = vector.multi_reduction <add>, %83, %cst_31 [1] : vector<32x128xf32> to vector<32xf32>
    %85 = vector.shape_cast %84 : vector<32xf32> to vector<32x1xf32>
    %cst_32 = arith.constant 3.125000e-02 : f32
    %86 = vector.broadcast %cst_32 : f32 to vector<32x1xf32>
    %87 = arith.mulf %85, %86 : vector<32x1xf32>
    %88 = vector.broadcast %87 : vector<32x1xf32> to vector<32x128xf32>
    %89 = arith.subf %83, %88 : vector<32x128xf32>
    %90 = vector.broadcast %4 : vector<1x128xf32> to vector<32x128xf32>
    %91 = arith.mulf %89, %90 : vector<32x128xf32>
    %92 = arith.mulf %91, %91 : vector<32x128xf32>
    %cst_33 = arith.constant dense<0.000000e+00> : vector<32xf32>
    %93 = vector.multi_reduction <add>, %92, %cst_33 [1] : vector<32x128xf32> to vector<32xf32>
    %94 = vector.shape_cast %93 : vector<32xf32> to vector<32x1xf32>
    %cst_34 = arith.constant 3.125000e-02 : f32
    %95 = vector.broadcast %cst_34 : f32 to vector<32x1xf32>
    %96 = arith.mulf %94, %95 : vector<32x1xf32>
    %cst_35 = arith.constant 9.99999974E-6 : f32
    %97 = vector.broadcast %cst_35 : f32 to vector<32x1xf32>
    %98 = arith.addf %96, %97 : vector<32x1xf32>
    %99 = math.rsqrt %98 : vector<32x1xf32>
    %100 = vector.broadcast %99 : vector<32x1xf32> to vector<32x128xf32>
    %101 = arith.mulf %91, %100 : vector<32x128xf32>
    %102 = vector.broadcast %77 : vector<1x128xf32> to vector<32x128xf32>
    %103 = arith.mulf %101, %102 : vector<32x128xf32>
    %104 = vector.broadcast %78 : vector<1x128xf32> to vector<32x128xf32>
    %105 = arith.addf %103, %104 : vector<32x128xf32>
    %c0_36 = arith.constant 0 : index
    %c0_37 = arith.constant 0 : index
    %106 = vector.load %arg6[%c0_36, %c0_37] : memref<32x128xf32, #tpu.memory_space<vmem>>, vector<32x128xf32>
    tpu.vector_store %arg6[%c0_36, %c0_37], %105 {strides = array<i32>} : memref<32x128xf32, #tpu.memory_space<vmem>>, vector<32x128xf32>,
    return
  }
  func.func @transform_0(%arg0: i32) -> (i32, i32) {
    %c0_i32 = arith.constant 0 : i32
    %c0_i32_0 = arith.constant 0 : i32
    return %arg0, %c0_i32 : i32, i32
  }
  func.func @transform_1(%arg0: i32) -> (i32, i32) {
    %c0_i32 = arith.constant 0 : i32
    %c0_i32_0 = arith.constant 0 : i32
    %c0_i32_1 = arith.constant 0 : i32
    return %c0_i32, %c0_i32_0 : i32, i32
  }
  func.func @transform_2(%arg0: i32) -> (i32, i32) {
    %c0_i32 = arith.constant 0 : i32
    %c0_i32_0 = arith.constant 0 : i32
    %c0_i32_1 = arith.constant 0 : i32
    return %c0_i32, %c0_i32_0 : i32, i32
  }
  func.func @transform_3(%arg0: i32) -> (i32, i32, i32) {
    %c0_i32 = arith.constant 0 : i32
    %c0_i32_0 = arith.constant 0 : i32
    %c0_i32_1 = arith.constant 0 : i32
    %c0_i32_2 = arith.constant 0 : i32
    return %c0_i32, %c0_i32_0, %c0_i32_1 : i32, i32, i32
  }
  func.func @transform_4(%arg0: i32) -> (i32, i32, i32) {
    %c0_i32 = arith.constant 0 : i32
    %c0_i32_0 = arith.constant 0 : i32
    %c0_i32_1 = arith.constant 0 : i32
    %c0_i32_2 = arith.constant 0 : i32
    return %c0_i32, %c0_i32_0, %c0_i32_1 : i32, i32, i32
  }
  func.func @transform_5(%arg0: i32) -> (i32, i32) {
    %c0_i32 = arith.constant 0 : i32
    %c0_i32_0 = arith.constant 0 : i32
    return %arg0, %c0_i32 : i32, i32
  }
}

</mosaic_0001>

<bundles_post_ra>
// kernel: tpu_custom_call.1
= control target key start
LH: loop header
LB: loop body
LE: loop exit
PB: predicated region body
PF: predicated region fallthrough
CT: control target
= control target key end

     0   :  { %10 = vsyncpa [#allocation3], 0  ;;  %s1227_s0 = inlined_call_operand.hbm [shape: f32[32,128], index: 0, kind: input, shape index: {}]   ;;  %s1228_s1 = inlined_call_operand.hbm [shape: f32[128,128], index: 1, kind: input, shape index: {}]   ;;  %s1229_s2 = inlined_call_operand.vmem [shape: f32[3,128], index: 2, kind: input, shape index: {}]   ;;  %s1230_s3 = inlined_call_operand.hbm [shape: f32[2,128,128], index: 3, kind: input, shape index: {}]   ;;  %s1231_s4 = inlined_call_operand.vmem [shape: f32[2,3,128], index: 4, kind: input, shape index: {}]   ;;  %s1232_s5 = inlined_call_operand.hbm [shape: f32[32,128], index: 5, kind: output, shape index: {}]  }
   0x1   :  { %11 = vsyncpa [#allocation6], 0 }
   0x2   :  { %12 = vsyncpa [#allocation4], 0  ;;  %s1030_s18 = smov [#allocation5]   ;;  %s1031_s20 = smov [#allocation2]  }
   0x3   :  { %s30_s19 = sshll.u32 %s1030_s18, 4  ;;  %s18_s21 = sshll.u32 %s1031_s20, 4  ;;  %s31_s19 = int_to_ptr.vmem [resolvable:$true] %s30_s19  ;;  %s1067_s21 = int_to_ptr.vmem [resolvable:$true] %s18_s21 }
   0x4   :  { %s936_s24 = scalar_lea.hbm %s1228_s1, 2048 }
   0x5   :  { %p937_p0 = scmp.ne.s32.totalorder %s1228_s1, %s936_s24  ;;  %p940_p1 = scmp.lt.u32.totalorder %s936_s24, %s1228_s1 }
   0x7   :  { %p942_p2 = pnand %p940_p1, %p937_p0 }
   0x9   :  { %945 = shalt.err (!%p942_p2)
}
   0xa   :  { %s946_s29 = scalar_lea.vmem %s31_s19, 2048  ;;  %p951_p4 = scmp.lt.s32.totalorder %s31_s19, %s31_s19 }
   0xb   :  { %p947_p3 = scmp.ne.s32.totalorder %s31_s19, %s946_s29  ;;  %p952_p5 = scmp.lt.s32.totalorder %s946_s29, %s946_s29 }
   0xd   :  { %p953_p6 = por %p952_p5, %p951_p4 }
   0xf   :  { %p954_p7 = pnand %p953_p6, %p947_p3 }
  0x11   :  { %957 = shalt.err (!%p954_p7)
}
  0x12   :  { %s1032_s30 = smov 128   ;;  %s1033_s6 = smov 8  }
  0x13   :  { %36 = dma.hbm_to_vmem [thread:$0]  %s1228_s1, 2048, %s31_s19, [#allocation6], %s1032_s30, %s1032_s30, %s1033_s6  }
  0x14   :  { %s958_s11 = scalar_lea.hbm %s1227_s0, 512 }
  0x15   :  { %p959_p8 = scmp.ne.s32.totalorder %s1227_s0, %s958_s11  ;;  %p962_p9 = scmp.lt.u32.totalorder %s958_s11, %s1227_s0 }
  0x17   :  { %p964_p10 = pnand %p962_p9, %p959_p8 }
  0x19   :  { %967 = shalt.err (!%p964_p10)
}
  0x1a   :  { %s968_s16 = scalar_lea.vmem %s1067_s21, 512  ;;  %p973_p12 = scmp.lt.s32.totalorder %s1067_s21, %s1067_s21 }
  0x1b   :  { %p969_p11 = scmp.ne.s32.totalorder %s1067_s21, %s968_s16  ;;  %p974_p13 = scmp.lt.s32.totalorder %s968_s16, %s968_s16 }
  0x1d   :  { %p975_p0 = por %p974_p13, %p973_p12 }
  0x1f   :  { %p976_p1 = pnand %p975_p0, %p969_p11 }
  0x21   :  { %979 = shalt.err (!%p976_p1)
}
  0x22   :  { %24 = dma.hbm_to_vmem [thread:$0]  %s1227_s0, 512, %s1067_s21, [#allocation3], %s1032_s30, %s1032_s30, %s1033_s6  }
  0x23   :  { %s1034_s18 = smov [#allocation7]   ;;  %s980_s23 = scalar_lea.hbm %s1230_s3, 4096 }
  0x24   :  { %s44_s19 = sshll.u32 %s1034_s18, 4  ;;  %p981_p2 = scmp.ne.s32.totalorder %s1230_s3, %s980_s23  ;;  %s45_s19 = int_to_ptr.vmem [resolvable:$true] %s44_s19 }
  0x25   :  { %p984_p3 = scmp.lt.u32.totalorder %s980_s23, %s1230_s3 }
  0x27   :  { %p986_p4 = pnand %p984_p3, %p981_p2 }
  0x29   :  { %989 = shalt.err (!%p986_p4)
}
  0x2a   :  { %s990_s28 = scalar_lea.vmem %s45_s19, 4096  ;;  %p995_p6 = scmp.lt.s32.totalorder %s45_s19, %s45_s19 }
  0x2b   :  { %p991_p5 = scmp.ne.s32.totalorder %s45_s19, %s990_s28  ;;  %p996_p7 = scmp.lt.s32.totalorder %s990_s28, %s990_s28 }
  0x2d   :  { %p997_p8 = por %p996_p7, %p995_p6 }
  0x2f   :  { %p998_p9 = pnand %p997_p8, %p991_p5 }
  0x31   :  { %1001 = shalt.err (!%p998_p9)
}
  0x32   :  { %50 = dma.hbm_to_vmem [thread:$0]  %s1230_s3, 4096, %s45_s19, [#allocation6], %s1032_s30, %s1032_s30, %s1033_s6  }
  0x33   :  { %1024 = dma.done.wait [#allocation3], 512  }
  0x34   :  { %1025 = vsyncadd [#allocation3], 4294966784 }
  0x35   :  { %1026 = dma.done.wait [#allocation6], 6144  }
  0x36   :  { %1027 = vsyncadd [#allocation6], 4294961152  ;;  %v71_v0 = vld [vmem:[#allocation5] sm:$0xff]  ;;  %v72_v1 = vld [vmem:[#allocation5 + $0x8] sm:$0xff]  ;;  %v62_v28 = vlaneseq  ;;  %v1035_v54 = vmov 0.0  }
  0x37   :  { %v73_v2 = vld [vmem:[#allocation5 + $0x10] sm:$0xff]  ;;  %v793_v3 = vpack.c.bf16 %v72_v1, %v71_v0  ;;  %v74_v4 = vld [vmem:[#allocation5 + $0x18] sm:$0xff]  ;;  %v75_v6 = vld [vmem:[#allocation5 + $0x20] sm:$0xff] }
  0x38   :  { %v797_v5 = vpack.c.bf16 %v74_v4, %v73_v2  ;;  %v76_v7 = vld [vmem:[#allocation5 + $0x28] sm:$0xff]  ;;  %v67_v9 = vld [vmem:[#allocation2] sm:$0xff]  ;;  %v77_v10 = vld [vmem:[#allocation5 + $0x30] sm:$0xff]  ;;  %v1119_v29 = vshrl.u32 %v62_v28, 7  ;;  %v63_v51 = vand.u32 127, %v62_v28 }
  0x39   :  { %794 = vmatprep.subr.bf16.mxu0 %v793_v3  ;;  %v801_v8 = vpack.c.bf16 %v76_v7, %v75_v6  ;;  %v78_v11 = vld [vmem:[#allocation5 + $0x38] sm:$0xff]  ;;  %711 = vmatprep.mubr.f32.mxu0 %v67_v9  ;;  %v79_v13 = vld [vmem:[#allocation5 + $0x40] sm:$0xff]  ;;  %v80_v14 = vld [vmem:[#allocation5 + $0x48] sm:$0xff] }
  0x3a   :  { %796 = vmatpush3.bf16.msra.mxu0 %v793_v3  ;;  %v805_v12 = vpack.c.bf16 %v78_v11, %v77_v10  ;;  %v809_v15 = vpack.c.bf16 %v80_v14, %v79_v13  ;;  %v81_v16 = vld [vmem:[#allocation5 + $0x50] sm:$0xff]  ;;  %v82_v17 = vld [vmem:[#allocation5 + $0x58] sm:$0xff]  ;;  %v83_v19 = vld [vmem:[#allocation5 + $0x60] sm:$0xff]  ;;  %v1122_v30 = vsub.s32 0, %v1119_v29  ;;  %vm64_vm0 = vcmp.lt.s32.totalorder %v63_v51, 32 }
  0x3b   :  { %798 = vmatprep.subr.bf16.mxu0 %v797_v5  ;;  %v813_v18 = vpack.c.bf16 %v82_v17, %v81_v16  ;;  %v84_v20 = vld [vmem:[#allocation5 + $0x68] sm:$0xff]  ;;  %v85_v22 = vld [vmem:[#allocation5 + $0x70] sm:$0xff]  ;;  %v86_v23 = vld [vmem:[#allocation5 + $0x78] sm:$0xff]  ;;  %v1131_v55 = vsel %vm64_vm0, 1.0, %v1035_v54 }
  0x3c   :  { %v817_v21 = vpack.c.bf16 %v84_v20, %v83_v19  ;;  %v821_v24 = vpack.c.bf16 %v86_v23, %v85_v22  ;;  %v68_v25 = vld [vmem:[#allocation2 + $0x8] sm:$0xff]  ;;  %v69_v26 = vld [vmem:[#allocation2 + $0x10] sm:$0xff]  ;;  %v70_v27 = vld [vmem:[#allocation2 + $0x18] sm:$0xff] }
  0x3d   :  { %v1127_v31 = vld [vmem:[%s1229_s2] sm:$0x7]  ;;  %v246_v46 = vld [vmem:[#allocation7 + $0x8] sm:$0xff]  ;;  %v247_v47 = vld [vmem:[#allocation7 + $0x10] sm:$0xff] }
  0x3e   :  { %800 = vmatpush3.bf16.msra.mxu0 %v797_v5  ;;  %v91_v32 = vrot.slane %v1127_v31, %v1122_v30  ;;  %v245_v45 = vld [vmem:[#allocation7] sm:$0xff]  ;;  %v248_v49 = vld [vmem:[#allocation7 + $0x18] sm:$0xff]  ;;  %v250_v11 = vld [vmem:[#allocation7 + $0x28] sm:$0xff] }
  0x3f   :  { %802 = vmatprep.subr.bf16.mxu0 %v801_v8  ;;  %v825_v48 = vpack.c.bf16 %v246_v46, %v245_v45  ;;  %v829_v50 = vpack.c.bf16 %v248_v49, %v247_v47  ;;  %v249_v10 = vld [vmem:[#allocation7 + $0x20] sm:$0xff]  ;;  %v251_v13 = vld [vmem:[#allocation7 + $0x30] sm:$0xff]  ;;  %v252_v14 = vld [vmem:[#allocation7 + $0x38] sm:$0xff] }
  0x40   :  { %v253_v16 = vld [vmem:[#allocation7 + $0x40] sm:$0xff]  ;;  %v254_v17 = vld [vmem:[#allocation7 + $0x48] sm:$0xff]  ;;  %v255_v19 = vld [vmem:[#allocation7 + $0x50] sm:$0xff] }
  0x41   :  { %826 = vmatprep.subr.bf16.mxu1 %v825_v48  ;;  %v256_v20 = vld [vmem:[#allocation7 + $0x58] sm:$0xff]  ;;  %v257_v22 = vld [vmem:[#allocation7 + $0x60] sm:$0xff]  ;;  %v258_v23 = vld [vmem:[#allocation7 + $0x68] sm:$0xff] }
  0x42   :  { %804 = vmatpush3.bf16.msra.mxu0 %v801_v8  ;;  %828 = vmatpush3.bf16.msra.mxu1 %v825_v48 }
  0x43   :  { %806 = vmatprep.subr.bf16.mxu0 %v805_v12  ;;  %830 = vmatprep.subr.bf16.mxu1 %v829_v50 }
  0x46   :  { %808 = vmatpush3.bf16.msra.mxu0 %v805_v12  ;;  %832 = vmatpush3.bf16.msra.mxu1 %v829_v50  ;;  %v833_v12 = vpack.c.bf16 %v250_v11, %v249_v10 }
  0x47   :  { %810 = vmatprep.subr.bf16.mxu0 %v809_v15 }
  0x48   :  { %834 = vmatprep.subr.bf16.mxu1 %v833_v12 }
  0x4a   :  { %812 = vmatpush3.bf16.msra.mxu0 %v809_v15  ;;  %836 = vmatpush3.bf16.msra.mxu1 %v833_v12  ;;  %v837_v15 = vpack.c.bf16 %v252_v14, %v251_v13  ;;  %v420_v12 = vld [vmem:[#allocation7 + $0x80] sm:$0xff]  ;;  %v421_v13 = vld [vmem:[#allocation7 + $0x88] sm:$0xff]  ;;  %v422_v14 = vld [vmem:[#allocation7 + $0x90] sm:$0xff] }
  0x4b   :  { %814 = vmatprep.subr.bf16.mxu0 %v813_v18 }
  0x4c   :  { %838 = vmatprep.subr.bf16.mxu1 %v837_v15 }
  0x4e   :  { %816 = vmatpush3.bf16.msra.mxu0 %v813_v18  ;;  %840 = vmatpush3.bf16.msra.mxu1 %v837_v15  ;;  %v841_v18 = vpack.c.bf16 %v254_v17, %v253_v16  ;;  %v857_v15 = vpack.c.bf16 %v421_v13, %v420_v12  ;;  %v423_v16 = vld [vmem:[#allocation7 + $0x98] sm:$0xff] }
  0x4f   :  { %818 = vmatprep.subr.bf16.mxu0 %v817_v21  ;;  %v861_v17 = vpack.c.bf16 %v423_v16, %v422_v14 }
  0x50   :  { %842 = vmatprep.subr.bf16.mxu1 %v841_v18 }
  0x52   :  { %820 = vmatpush3.bf16.msra.mxu0 %v817_v21  ;;  %844 = vmatpush3.bf16.msra.mxu1 %v841_v18  ;;  %v845_v21 = vpack.c.bf16 %v256_v20, %v255_v19 }
  0x53   :  { %822 = vmatprep.subr.bf16.mxu0 %v821_v24 }
  0x54   :  { %846 = vmatprep.subr.bf16.mxu1 %v845_v21 }
  0x56   :  { %824 = vmatpush3.bf16.msra.mxu0 %v821_v24  ;;  %v849_v24 = vpack.c.bf16 %v258_v23, %v257_v22  ;;  %848 = vmatpush3.bf16.msra.mxu1 %v845_v21 }
  0x57   :  { %858 = vmatprep.subr.bf16.mxu0 %v857_v15 }
  0x58   :  { %850 = vmatprep.subr.bf16.mxu1 %v849_v24 }
  0x59   :  { %712 = vmatmul.mubr.f32.vlgmr.msra.gmra.mrb[0].mxu0 %v68_v25  ;;  %v259_v25 = vld [vmem:[#allocation7 + $0x70] sm:$0xff] }
  0x5a   :  { %714 = vmatprep.mubr.f32.mxu0 %v69_v26  ;;  %v260_v26 = vld [vmem:[#allocation7 + $0x78] sm:$0xff]  ;;  %852 = vmatpush3.bf16.msra.mxu1 %v849_v24 }
  0x5b   :  { %860 = vmatpush3.bf16.msra.mxu0 %v857_v15 }
  0x5c   :  { %862 = vmatprep.subr.bf16.mxu0 %v861_v17 }
  0x5d   :  { %715 = vmatmul.mubr.f32.gmra.mrb[2].mxu0 %v70_v27  ;;  %v853_v27 = vpack.c.bf16 %v260_v26, %v259_v25 }
  0x5f   :  { %854 = vmatprep.subr.bf16.mxu1 %v853_v27  ;;  %864 = vmatpush3.bf16.msra.mxu0 %v861_v17 }
  0x60   :  { %856 = vmatpush3.bf16.msra.mxu1 %v853_v27 }
  0x61   :  { %889 = vmatprep.subr.bf16.mxu1 %v857_v15 }
 0x12c   :  { %v713_v33 = vpop.f32.mrb[0].mxu0 }
 0x12d   :  { %v158_v34 = vpop.f32.mrb[1].mxu0  ;;  %v164_v36 = vadd.f32 %v713_v33, %v91_v32 }
 0x12e   :  { %v159_v35 = vadd.f32 %v158_v34, %v91_v32 }
 0x12f   :  { %v178_v41 = vmax.f32 %v164_v36, 0.0 }
 0x130   :  { %v177_v37 = vmax.f32 %v159_v35, 0.0  ;;  %v716_v38 = vpop.f32.mrb[2].mxu0 }
 0x131   :  { %v168_v39 = vpop.f32.mrb[3].mxu0  ;;  %v174_v42 = vadd.f32 %v716_v38, %v91_v32 }
 0x132   :  { %v169_v40 = vadd.f32 %v168_v39, %v91_v32  ;;  %181 = vadd.xlane.f32.xlu0 %v177_v37 }
 0x133   :  { %v180_v44 = vmax.f32 %v174_v42, 0.0  ;;  %v1154_v42 = vsub.s32 1, %v1119_v29 }
 0x134   :  { %v179_v43 = vmax.f32 %v169_v40, 0.0 }
 0x135   :  { %v232_v45 = vrot.slane %v1127_v31, %v1154_v42 }
 0x136   :  { %185 = vadd.xlane.f32.xlu1 %v179_v43  ;;  %183 = vadd.xlane.f32.xlu0 %v178_v41 }
 0x13a   :  { %187 = vadd.xlane.f32.xlu1 %v180_v44 }
 0x1bf   :  { %v182_v52 = vpop.xlane.xlu0 %181 }
 0x1c0   :  { %v189_v53 = vmul.f32 0.03125, %v182_v52 }
 0x1c2   :  { %v193_v56 = vsub.f32 %v177_v37, %v189_v53 }
 0x1c3   :  { %v186_v57 = vpop.xlane.xlu1 %185  ;;  %v184_v58 = vpop.xlane.xlu0 %183 }
 0x1c4   :  { %v191_v59 = vmul.f32 0.03125, %v186_v57  ;;  %v190_v60 = vmul.f32 0.03125, %v184_v58  ;;  %v1134_v61 = vmul.f32 %v1131_v55, %v193_v56 }
 0x1c6   :  { %v195_v62 = vsub.f32 %v179_v43, %v191_v59  ;;  %v194_v63 = vsub.f32 %v178_v41, %v190_v60  ;;  %v201_v0 = vmul.f32 %v1134_v61, %v1134_v61 }
 0x1c7   :  { %v188_v1 = vpop.xlane.xlu1 %187 }
 0x1c8   :  { %v192_v2 = vmul.f32 0.03125, %v188_v1  ;;  %205 = vadd.xlane.f32.xlu0 %v201_v0  ;;  %v1139_v3 = vmul.f32 %v1131_v55, %v195_v62  ;;  %v1142_v4 = vmul.f32 %v1131_v55, %v194_v63  ;;  %v1170_v62 = vld [vmem:[%s1231_s4] sm:$0x7] }
 0x1c9   :  { %v265_v63 = vrot.slane %v1170_v62, %v1122_v30 }
 0x1ca   :  { %v196_v5 = vsub.f32 %v180_v44, %v192_v2  ;;  %v203_v6 = vmul.f32 %v1139_v3, %v1139_v3  ;;  %v202_v7 = vmul.f32 %v1142_v4, %v1142_v4  ;;  %v1157_v44 = vsub.s32 2, %v1119_v29 }
 0x1cc   :  { %209 = vadd.xlane.f32.xlu0 %v203_v6  ;;  %207 = vadd.xlane.f32.xlu1 %v202_v7  ;;  %v1149_v8 = vmul.f32 %v1131_v55, %v196_v5  ;;  %v240_v48 = vrot.slane %v1127_v31, %v1157_v44  ;;  %v414_v12 = vrot.slane %v1170_v62, %v1157_v44 }
 0x1ce   :  { %v204_v9 = vmul.f32 %v1149_v8, %v1149_v8 }
 0x1d0   :  { %211 = vadd.xlane.f32.xlu1 %v204_v9 }
 0x255   :  { %v206_v28 = vpop.xlane.xlu0 %205 }
 0x256   :  { %v213_v32 = vmul.f32 0.03125, %v206_v28 }
 0x258   :  { %v217_v33 = vadd.f32 1e-05, %v213_v32 }
 0x259   :  { %v208_v34 = vpop.xlane.xlu1 %207  ;;  %v210_v35 = vpop.xlane.xlu0 %209 }
 0x25a   :  { %912 = vrsqrt.f32 %v217_v33  ;;  %v214_v36 = vmul.f32 0.03125, %v208_v34  ;;  %v215_v37 = vmul.f32 0.03125, %v210_v35 }
 0x25c   :  { %v218_v38 = vadd.f32 1e-05, %v214_v36  ;;  %v219_v39 = vadd.f32 1e-05, %v215_v37 }
 0x25d   :  { %v212_v40 = vpop.xlane.xlu1 %211 }
 0x25e   :  { %914 = vrsqrt.f32 %v218_v38  ;;  %v216_v41 = vmul.f32 0.03125, %v212_v40 }
 0x25f   :  { %916 = vrsqrt.f32 %v219_v39 }
 0x260   :  { %v220_v43 = vadd.f32 1e-05, %v216_v41  ;;  %v424_v41 = vld [vmem:[#allocation7 + $0xa0] sm:$0xff] }
 0x262   :  { %918 = vrsqrt.f32 %v220_v43  ;;  %v425_v43 = vld [vmem:[#allocation7 + $0xa8] sm:$0xff] }
 0x264   :  { %v913_v46 = vpop.eup %912 }
 0x265   :  { %v225_v47 = vmul.f32 %v913_v46, %v1134_v61  ;;  %v426_v46 = vld [vmem:[#allocation7 + $0xb0] sm:$0xff] }
 0x267   :  { %v233_v49 = vmul.f32 %v232_v45, %v225_v47  ;;  %v427_v47 = vld [vmem:[#allocation7 + $0xb8] sm:$0xff] }
 0x268   :  { %v915_v50 = vpop.eup %914 }
 0x269   :  { %v917_v51 = vpop.eup %916  ;;  %v241_v52 = vadd.f32 %v240_v48, %v233_v49  ;;  %v226_v53 = vmul.f32 %v915_v50, %v1142_v4  ;;  %v428_v49 = vld [vmem:[#allocation7 + $0xc0] sm:$0xff]  ;;  %v429_v50 = vld [vmem:[#allocation7 + $0xc8] sm:$0xff] }
 0x26a   :  { %v227_v54 = vmul.f32 %v917_v51, %v1139_v3  ;;  %v873_v51 = vpack.c.bf16 %v429_v50, %v428_v49 }
 0x26b   :  { %749 = vmatprep.mubr.f32.mxu1 %v241_v52  ;;  %v234_v29 = vmul.f32 %v232_v45, %v226_v53  ;;  %v430_v52 = vld [vmem:[#allocation7 + $0xd0] sm:$0xff]  ;;  %v431_v53 = vld [vmem:[#allocation7 + $0xd8] sm:$0xff] }
 0x26c   :  { %v919_v56 = vpop.eup %918  ;;  %v235_v57 = vmul.f32 %v232_v45, %v227_v54  ;;  %v877_v54 = vpack.c.bf16 %v431_v53, %v430_v52 }
 0x26d   :  { %v242_v58 = vadd.f32 %v240_v48, %v234_v29  ;;  %v228_v59 = vmul.f32 %v919_v56, %v1149_v8  ;;  %v432_v29 = vld [vmem:[#allocation7 + $0xe0] sm:$0xff]  ;;  %v433_v56 = vld [vmem:[#allocation7 + $0xe8] sm:$0xff] }
 0x26e   :  { %v243_v60 = vadd.f32 %v240_v48, %v235_v57  ;;  %v881_v57 = vpack.c.bf16 %v433_v56, %v432_v29 }
 0x26f   :  { %750 = vmatmul.mubr.f32.vlgmr.msra.gmra.mrb[0].mxu1 %v242_v58  ;;  %v236_v61 = vmul.f32 %v232_v45, %v228_v59  ;;  %v865_v45 = vpack.c.bf16 %v425_v43, %v424_v41  ;;  %v434_v58 = vld [vmem:[#allocation7 + $0xf0] sm:$0xff]  ;;  %v435_v59 = vld [vmem:[#allocation7 + $0xf8] sm:$0xff] }
 0x270   :  { %752 = vmatprep.mubr.f32.mxu1 %v243_v60  ;;  %897 = vmatpush3.bf16.msra.mxu1 %v857_v15  ;;  %v885_v60 = vpack.c.bf16 %v435_v59, %v434_v58 }
 0x271   :  { %v244_v31 = vadd.f32 %v240_v48, %v236_v61  ;;  %890 = vmatprep.subr.bf16.mxu1 %v861_v17  ;;  %866 = vmatprep.subr.bf16.mxu0 %v865_v45  ;;  %v869_v48 = vpack.c.bf16 %v427_v47, %v426_v46 }
 0x272   :  { %868 = vmatpush3.bf16.msra.mxu0 %v865_v45 }
 0x273   :  { %753 = vmatmul.mubr.f32.gmra.mrb[2].mxu1 %v244_v31  ;;  %870 = vmatprep.subr.bf16.mxu0 %v869_v48 }
 0x274   :  { %898 = vmatpush3.bf16.msra.mxu1 %v861_v17 }
 0x275   :  { %891 = vmatprep.subr.bf16.mxu1 %v865_v45 }
 0x276   :  { %872 = vmatpush3.bf16.msra.mxu0 %v869_v48 }
 0x277   :  { %874 = vmatprep.subr.bf16.mxu0 %v873_v51 }
 0x278   :  { %899 = vmatpush3.bf16.msra.mxu1 %v865_v45 }
 0x279   :  { %892 = vmatprep.subr.bf16.mxu1 %v869_v48 }
 0x27a   :  { %876 = vmatpush3.bf16.msra.mxu0 %v873_v51 }
 0x27b   :  { %878 = vmatprep.subr.bf16.mxu0 %v877_v54 }
 0x27c   :  { %900 = vmatpush3.bf16.msra.mxu1 %v869_v48 }
 0x27d   :  { %893 = vmatprep.subr.bf16.mxu1 %v873_v51 }
 0x27e   :  { %880 = vmatpush3.bf16.msra.mxu0 %v877_v54 }
 0x27f   :  { %882 = vmatprep.subr.bf16.mxu0 %v881_v57 }
 0x280   :  { %901 = vmatpush3.bf16.msra.mxu1 %v873_v51 }
 0x281   :  { %894 = vmatprep.subr.bf16.mxu1 %v877_v54 }
 0x282   :  { %884 = vmatpush3.bf16.msra.mxu0 %v881_v57 }
 0x283   :  { %886 = vmatprep.subr.bf16.mxu0 %v885_v60 }
 0x284   :  { %902 = vmatpush3.bf16.msra.mxu1 %v877_v54 }
 0x285   :  { %895 = vmatprep.subr.bf16.mxu1 %v881_v57 }
 0x286   :  { %888 = vmatpush3.bf16.msra.mxu0 %v885_v60 }
 0x288   :  { %903 = vmatpush3.bf16.msra.mxu1 %v881_v57 }
 0x289   :  { %896 = vmatprep.subr.bf16.mxu1 %v885_v60 }
 0x28c   :  { %904 = vmatpush3.bf16.msra.mxu1 %v885_v60 }
 0x342   :  { %v751_v0 = vpop.f32.mrb[0].mxu1 }
 0x343   :  { %v332_v1 = vpop.f32.mrb[1].mxu1  ;;  %v338_v3 = vadd.f32 %v751_v0, %v265_v63 }
 0x344   :  { %v333_v2 = vadd.f32 %v332_v1, %v265_v63 }
 0x345   :  { %v352_v8 = vmax.f32 %v338_v3, 0.0 }
 0x346   :  { %v351_v4 = vmax.f32 %v333_v2, 0.0  ;;  %v754_v5 = vpop.f32.mrb[2].mxu1 }
 0x347   :  { %v342_v6 = vpop.f32.mrb[3].mxu1  ;;  %v348_v9 = vadd.f32 %v754_v5, %v265_v63 }
 0x348   :  { %v343_v7 = vadd.f32 %v342_v6, %v265_v63  ;;  %355 = vadd.xlane.f32.xlu0 %v351_v4 }
 0x349   :  { %v354_v11 = vmax.f32 %v348_v9, 0.0  ;;  %v406_v9 = vrot.slane %v1170_v62, %v1154_v42 }
 0x34a   :  { %v353_v10 = vmax.f32 %v343_v7, 0.0 }
 0x34c   :  { %357 = vadd.xlane.f32.xlu0 %v352_v8  ;;  %359 = vadd.xlane.f32.xlu1 %v353_v10 }
 0x350   :  { %361 = vadd.xlane.f32.xlu1 %v354_v11 }
 0x3d5   :  { %v356_v18 = vpop.xlane.xlu0 %355 }
 0x3d6   :  { %v363_v19 = vmul.f32 0.03125, %v356_v18 }
 0x3d8   :  { %v367_v20 = vsub.f32 %v351_v4, %v363_v19 }
 0x3d9   :  { %v360_v21 = vpop.xlane.xlu1 %359  ;;  %v358_v22 = vpop.xlane.xlu0 %357 }
 0x3da   :  { %v365_v23 = vmul.f32 0.03125, %v360_v21  ;;  %v364_v24 = vmul.f32 0.03125, %v358_v22  ;;  %v1175_v25 = vmul.f32 %v1131_v55, %v367_v20 }
 0x3dc   :  { %v369_v26 = vsub.f32 %v353_v10, %v365_v23  ;;  %v368_v27 = vsub.f32 %v352_v8, %v364_v24  ;;  %v375_v28 = vmul.f32 %v1175_v25, %v1175_v25 }
 0x3dd   :  { %v362_v32 = vpop.xlane.xlu1 %361 }
 0x3de   :  { %v366_v33 = vmul.f32 0.03125, %v362_v32  ;;  %379 = vadd.xlane.f32.xlu0 %v375_v28  ;;  %v1180_v34 = vmul.f32 %v1131_v55, %v369_v26  ;;  %v1183_v35 = vmul.f32 %v1131_v55, %v368_v27  ;;  %v618_v26 = vld [vmem:[%s1231_s4 + $0x4] sm:$0x7]  ;;  %s1036_s4 = smov [#allocation8]  }
 0x3df   :  { %v441_v27 = vrot.slane %v618_v26, %v1122_v30  ;;  %s604_s10 = sshll.u32 %s1036_s4, 4  ;;  %s605_s10 = int_to_ptr.vmem [resolvable:$true] %s604_s10 }
 0x3e0   :  { %v370_v36 = vsub.f32 %v354_v11, %v366_v33  ;;  %v377_v37 = vmul.f32 %v1180_v34, %v1180_v34  ;;  %v376_v38 = vmul.f32 %v1183_v35, %v1183_v35  ;;  %s1002_s11 = scalar_lea.vmem %s605_s10, 512  ;;  %p1007_p11 = scmp.lt.s32.totalorder %s605_s10, %s605_s10 }
 0x3e1   :  { %p1003_p10 = scmp.ne.s32.totalorder %s605_s10, %s1002_s11  ;;  %p1008_p12 = scmp.lt.s32.totalorder %s1002_s11, %s1002_s11 }
 0x3e2   :  { %383 = vadd.xlane.f32.xlu1 %v377_v37  ;;  %381 = vadd.xlane.f32.xlu0 %v376_v38  ;;  %v1190_v39 = vmul.f32 %v1131_v55, %v370_v36 }
 0x3e3   :  { %p1009_p13 = por %p1008_p12, %p1007_p11 }
 0x3e4   :  { %v378_v40 = vmul.f32 %v1190_v39, %v1190_v39 }
 0x3e5   :  { %p1010_p0 = pnand %p1009_p13, %p1003_p10 }
 0x3e6   :  { %385 = vadd.xlane.f32.xlu1 %v378_v40 }
 0x46b   :  { %v380_v61 = vpop.xlane.xlu0 %379 }
 0x46c   :  { %v387_v31 = vmul.f32 0.03125, %v380_v61 }
 0x46e   :  { %v391_v63 = vadd.f32 1e-05, %v387_v31 }
 0x46f   :  { %v384_v0 = vpop.xlane.xlu1 %383  ;;  %v382_v1 = vpop.xlane.xlu0 %381 }
 0x470   :  { %920 = vrsqrt.f32 %v391_v63  ;;  %v389_v2 = vmul.f32 0.03125, %v384_v0  ;;  %v388_v3 = vmul.f32 0.03125, %v382_v1 }
 0x472   :  { %v393_v4 = vadd.f32 1e-05, %v389_v2  ;;  %v392_v5 = vadd.f32 1e-05, %v388_v3 }
 0x473   :  { %v386_v6 = vpop.xlane.xlu1 %385 }
 0x474   :  { %922 = vrsqrt.f32 %v393_v4  ;;  %v390_v7 = vmul.f32 0.03125, %v386_v6 }
 0x475   :  { %924 = vrsqrt.f32 %v392_v5 }
 0x476   :  { %v394_v8 = vadd.f32 1e-05, %v390_v7 }
 0x478   :  { %926 = vrsqrt.f32 %v394_v8 }
 0x47a   :  { %v921_v10 = vpop.eup %920 }
 0x47b   :  { %v399_v11 = vmul.f32 %v921_v10, %v1175_v25 }
 0x47d   :  { %v407_v13 = vmul.f32 %v406_v9, %v399_v11 }
 0x47e   :  { %v923_v14 = vpop.eup %922 }
 0x47f   :  { %v925_v15 = vpop.eup %924  ;;  %v415_v16 = vadd.f32 %v414_v12, %v407_v13  ;;  %v401_v17 = vmul.f32 %v923_v14, %v1180_v34  ;;  %v590_v14 = vrot.slane %v618_v26, %v1157_v44 }
 0x480   :  { %v400_v18 = vmul.f32 %v925_v15, %v1183_v35 }
 0x481   :  { %787 = vmatprep.mubr.f32.mxu0 %v415_v16  ;;  %v409_v19 = vmul.f32 %v406_v9, %v401_v17 }
 0x482   :  { %v927_v20 = vpop.eup %926  ;;  %v408_v21 = vmul.f32 %v406_v9, %v400_v18 }
 0x483   :  { %v402_v22 = vmul.f32 %v927_v20, %v1190_v39  ;;  %v417_v23 = vadd.f32 %v414_v12, %v409_v19 }
 0x484   :  { %v416_v24 = vadd.f32 %v414_v12, %v408_v21 }
 0x485   :  { %790 = vmatprep.mubr.f32.mxu1 %v417_v23  ;;  %v410_v25 = vmul.f32 %v406_v9, %v402_v22 }
 0x486   :  { %788 = vmatmul.mubr.f32.vlgmr.msra.gmra.mrb[4].mxu0 %v416_v24 }
 0x487   :  { %v418_v62 = vadd.f32 %v414_v12, %v410_v25 }
 0x489   :  { %791 = vmatmul.mubr.f32.vlgmr.msra.gmra.mrb[4].mxu1 %v418_v62 }
 0x559   :  { %v789_v28 = vpop.f32.mrb[4].mxu0 }
 0x55a   :  { %v514_v32 = vadd.f32 %v789_v28, %v441_v27  ;;  %v508_v33 = vpop.f32.mrb[5].mxu0 }
 0x55b   :  { %v509_v34 = vadd.f32 %v508_v33, %v441_v27 }
 0x55c   :  { %v528_v35 = vmax.f32 %v514_v32, 0.0  ;;  %v792_v36 = vpop.f32.mrb[4].mxu1 }
 0x55d   :  { %v527_v37 = vmax.f32 %v509_v34, 0.0  ;;  %v524_v38 = vadd.f32 %v792_v36, %v441_v27  ;;  %v518_v39 = vpop.f32.mrb[5].mxu1 }
 0x55e   :  { %v519_v40 = vadd.f32 %v518_v39, %v441_v27  ;;  %533 = vadd.xlane.f32.xlu1 %v528_v35 }
 0x55f   :  { %v530_v41 = vmax.f32 %v524_v38, 0.0  ;;  %531 = vadd.xlane.f32.xlu0 %v527_v37 }
 0x560   :  { %v529_v43 = vmax.f32 %v519_v40, 0.0 }
 0x562   :  { %537 = vadd.xlane.f32.xlu1 %v530_v41 }
 0x563   :  { %535 = vadd.xlane.f32.xlu0 %v529_v43 }
 0x5eb   :  { %v534_v45 = vpop.xlane.xlu1 %533 }
 0x5ec   :  { %v540_v46 = vmul.f32 0.03125, %v534_v45  ;;  %v532_v47 = vpop.xlane.xlu0 %531 }
 0x5ed   :  { %v539_v30 = vmul.f32 0.03125, %v532_v47 }
 0x5ee   :  { %v544_v48 = vsub.f32 %v528_v35, %v540_v46 }
 0x5ef   :  { %v543_v49 = vsub.f32 %v527_v37, %v539_v30  ;;  %v538_v50 = vpop.xlane.xlu1 %537 }
 0x5f0   :  { %v542_v51 = vmul.f32 0.03125, %v538_v50  ;;  %v536_v52 = vpop.xlane.xlu0 %535  ;;  %v548_v53 = vmul.f32 %v1131_v55, %v544_v48 }
 0x5f1   :  { %v541_v54 = vmul.f32 0.03125, %v536_v52  ;;  %v547_v29 = vmul.f32 %v1131_v55, %v543_v49 }
 0x5f2   :  { %v546_v56 = vsub.f32 %v530_v41, %v542_v51  ;;  %v552_v57 = vmul.f32 %v548_v53, %v548_v53 }
 0x5f3   :  { %v545_v58 = vsub.f32 %v529_v43, %v541_v54  ;;  %v551_v59 = vmul.f32 %v547_v29, %v547_v29 }
 0x5f4   :  { %557 = vadd.xlane.f32.xlu1 %v552_v57  ;;  %v550_v60 = vmul.f32 %v1131_v55, %v546_v56 }
 0x5f5   :  { %555 = vadd.xlane.f32.xlu0 %v551_v59  ;;  %v549_v61 = vmul.f32 %v1131_v55, %v545_v58  ;;  %v582_v55 = vrot.slane %v618_v26, %v1154_v42 }
 0x5f6   :  { %v554_v31 = vmul.f32 %v550_v60, %v550_v60 }
 0x5f7   :  { %v553_v63 = vmul.f32 %v549_v61, %v549_v61 }
 0x5f8   :  { %561 = vadd.xlane.f32.xlu1 %v554_v31 }
 0x5f9   :  { %559 = vadd.xlane.f32.xlu0 %v553_v63 }
 0x681   :  { %v558_v0 = vpop.xlane.xlu1 %557 }
 0x682   :  { %v564_v1 = vmul.f32 0.03125, %v558_v0  ;;  %v556_v2 = vpop.xlane.xlu0 %555 }
 0x683   :  { %v563_v3 = vmul.f32 0.03125, %v556_v2 }
 0x684   :  { %v568_v4 = vadd.f32 1e-05, %v564_v1 }
 0x685   :  { %v567_v5 = vadd.f32 1e-05, %v563_v3  ;;  %v562_v6 = vpop.xlane.xlu1 %561 }
 0x686   :  { %928 = vrsqrt.f32 %v568_v4  ;;  %v566_v7 = vmul.f32 0.03125, %v562_v6  ;;  %v560_v8 = vpop.xlane.xlu0 %559 }
 0x687   :  { %930 = vrsqrt.f32 %v567_v5  ;;  %v565_v9 = vmul.f32 0.03125, %v560_v8 }
 0x688   :  { %v570_v10 = vadd.f32 1e-05, %v566_v7 }
 0x689   :  { %v569_v11 = vadd.f32 1e-05, %v565_v9 }
 0x68a   :  { %932 = vrsqrt.f32 %v570_v10 }
 0x68b   :  { %934 = vrsqrt.f32 %v569_v11 }
 0x690   :  { %v929_v12 = vpop.eup %928 }
 0x691   :  { %v931_v13 = vpop.eup %930  ;;  %v576_v15 = vmul.f32 %v929_v12, %v548_v53 }
 0x692   :  { %v575_v16 = vmul.f32 %v931_v13, %v547_v29 }
 0x693   :  { %v584_v17 = vmul.f32 %v582_v55, %v576_v15 }
 0x694   :  { %v933_v18 = vpop.eup %932  ;;  %v583_v19 = vmul.f32 %v582_v55, %v575_v16 }
 0x695   :  { %v935_v20 = vpop.eup %934  ;;  %v578_v21 = vmul.f32 %v933_v18, %v550_v60  ;;  %v592_v22 = vadd.f32 %v590_v14, %v584_v17 }
 0x696   :  { %v577_v23 = vmul.f32 %v935_v20, %v549_v61  ;;  %v591_v24 = vadd.f32 %v590_v14, %v583_v19 }
 0x697   :  { %v586_v25 = vmul.f32 %v582_v55, %v578_v21  ;;  %596 = vst [vmem:[#allocation8 + $0x8] sm:$0xff] %v592_v22 }
 0x698   :  { %v585_v62 = vmul.f32 %v582_v55, %v577_v23  ;;  %595 = vst [vmem:[#allocation8] sm:$0xff] %v591_v24 }
 0x699   :  { %v594_v42 = vadd.f32 %v590_v14, %v586_v25 }
 0x69a   :  { %v593_v27 = vadd.f32 %v590_v14, %v585_v62 }
 0x69b   :  { %598 = vst [vmem:[#allocation8 + $0x18] sm:$0xff] %v594_v42 }
 0x69c   :  { %597 = vst [vmem:[#allocation8 + $0x10] sm:$0xff] %v593_v27 }
 0x69d   :  { %1013 = shalt.err (!%p1010_p0)
}
 0x69e   :  { %s1014_s14 = scalar_lea.hbm %s1232_s5, 512 }
 0x69f   :  { %p1015_p1 = scmp.ne.s32.totalorder %s1232_s5, %s1014_s14  ;;  %p1018_p2 = scmp.lt.u32.totalorder %s1014_s14, %s1232_s5 }
 0x6a1   :  { %p1020_p3 = pnand %p1018_p2, %p1015_p1 }
 0x6a3   :  { %1023 = shalt.err (!%p1020_p3)
}
 0x6a4   :  { %610 = dma.vmem_to_hbm [thread:$0]  %s605_s10, 512, %s1232_s5, [#allocation4], %s1032_s30, %s1032_s30, %s1033_s6  }
 0x6a5   :  { %1028 = dma.done.wait [#allocation4], 512  }
 0x6a6   :  { %1029 = vsyncadd [#allocation4], 4294966784 }
 0x6a7   :  { %614 = vsyncpa [#allocation3], 1 }
 0x6a8   :  { %615 = vsyncpa [#allocation6], 1 }
 0x6a9   :  { %616 = vsyncpa [#allocation4], 1 }

</bundles_post_ra>
